<compile_context>
chip_gen: v6e
topology: v6e:2x2x1
jax: 0.10.0
libtpu: 0.0.40
codegen_flags: <defaults>
</compile_context>

<pallas_src>
import jax
import jax.numpy as jnp
from jax.experimental import pallas as pl
from jax.experimental.pallas import tpu as pltpu

N_QUBITS = 2
LANES = 512                  # lane-dense columns (multiple of 128)
SUBLANES = 8
DEFAULT_BLOCK_ROWS = 1024    # (1024, 512) f32 = 2 MiB per buffer


def _round_up(n, m):
    return (n + m - 1) // m * m


def _qnn_kernel(x_ref, w_ref, o_ref):
    """One dense batch tile.

    x_ref: (tile_rows, LANES) VMEM  — x0 angles, batch flattened row-major.
    w_ref: (1, N_QUBITS)      SMEM  — BasicEntanglerLayers weights.
    o_ref: (tile_rows, LANES) VMEM  — <Z on wire 0> per sample.
    """
    o_ref[...] = jnp.cos(x_ref[...] + w_ref[0, 0])


def qnn_forward(x, q_weights, *, block_rows=DEFAULT_BLOCK_ROWS,
                xla_fastpath_max_batch=32768, force_pallas=False):
    """x: (B, n_qubits) f32, q_weights: (1, n_qubits) f32 -> (B,) f32."""
    x = jnp.asarray(x, jnp.float32)
    # Errors loudly if weights are not single-layer (1, n_qubits) — the
    # analytic reduction below only holds in that case.
    w = jnp.asarray(q_weights, jnp.float32).reshape(1, N_QUBITS)
    B = x.shape[0]
    if B == 0:
        return jnp.zeros((0,), jnp.float32)

    x0 = x[:, 0]  # only the measured wire's angle feeds <Z0>

    if (not force_pallas) and B <= xla_fastpath_max_batch:
        # Launch + pad/reshape fixed cost dominates a single fused add+cos;
        # let XLA handle small/medium batches.
        return jnp.cos(x0 + w[0, 0])

    # Dense 2-D layout: row-major (rows, LANES), rows a multiple of 8.
    rows_needed = pl.cdiv(B, LANES)
    tile_rows = min(_round_up(block_rows, SUBLANES),
                    _round_up(rows_needed, SUBLANES))
    rows_pad = _round_up(rows_needed, tile_rows)
    b_pad = rows_pad * LANES
    n_blocks = rows_pad // tile_rows

    x0p = jnp.pad(x0, (0, b_pad - B)).reshape(rows_pad, LANES)

    out = pl.pallas_call(
        _qnn_kernel,
        out_shape=jax.ShapeDtypeStruct((rows_pad, LANES), jnp.float32),
        grid=(n_blocks,),
        in_specs=[
            pl.BlockSpec((tile_rows, LANES), lambda i: (i, 0)),
            pl.BlockSpec(memory_space=pltpu.MemorySpace.SMEM),
        ],
        out_specs=pl.BlockSpec((tile_rows, LANES), lambda i: (i, 0)),
        compiler_params=pltpu.CompilerParams(
            dimension_semantics=("parallel",)),
        cost_estimate=pl.CostEstimate(
            flops=b_pad, transcendentals=b_pad, bytes_accessed=8 * b_pad),
    )(x0p, w)
    return out.reshape(-1)[:B]


if __name__ == "__main__":
    key = jax.random.PRNGKey(0)
    kx, kw = jax.random.split(key)

    # Small shapes consistent with the module: batch of 8 samples, 2 angles.
    B = 8
    x = jax.random.normal(kx, (B, N_QUBITS), dtype=jnp.float32)
    q_weights = jax.random.normal(kw, (1, N_QUBITS), dtype=jnp.float32)

    # Analytic reference for this circuit: <Z0> = cos(x0 + w00).
    ref = jnp.cos(x[:, 0] + q_weights[0, 0])

    # 1) Force the Pallas kernel path (pads batch up to one (8, 512) tile).
    out = jax.block_until_ready(qnn_forward(x, q_weights, force_pallas=True))
    assert out.shape == (B,)
    assert jnp.allclose(out, ref, atol=1e-5), (out, ref)

    # 2) Multi-block grid path: 10007 samples, tiny (8, 512) tiles -> grid=(3,).
    B2 = 10007
    x2 = jax.random.normal(kx, (B2, N_QUBITS), dtype=jnp.float32)
    out2 = jax.block_until_ready(
        qnn_forward(x2, q_weights, block_rows=8, force_pallas=True))
    ref2 = jnp.cos(x2[:, 0] + q_weights[0, 0])
    assert out2.shape == (B2,)
    assert jnp.allclose(out2, ref2, atol=1e-5)

    # 3) XLA fast path (no Pallas) stays consistent.
    out3 = jax.block_until_ready(qnn_forward(x, q_weights))
    assert jnp.allclose(out3, ref, atol=1e-5)

    print("KERNEL_OK")
</pallas_src>

<mosaic_0001>
module attributes {stable_mosaic.version = 11 : i64} {
  func.func @_qnn_kernel(%arg0: i32, %arg1: memref<8x512xf32, #tpu.memory_space<vmem>>, %arg2: memref<1x2xf32, #tpu.memory_space<smem>>, %arg3: memref<8x512xf32, #tpu.memory_space<vmem>>) attributes {dimension_semantics = [#tpu.dimension_semantics<parallel>], iteration_bounds = array<i64: 1>, scalar_prefetch = 0 : i64, scratch_operands = 0 : i64, tpu.core_type = #tpu.core_type<tc>, window_params = [{transform_indices = @transform_0, window_bounds = array<i64: 8, 512>}, {transform_indices = @transform_1, window_bounds = array<i64: 1, 2>}, {transform_indices = @transform_2, window_bounds = array<i64: 8, 512>}]} {
    %c0 = arith.constant 0 : index
    %c0_0 = arith.constant 0 : index
    %0 = vector.load %arg1[%c0, %c0_0] : memref<8x512xf32, #tpu.memory_space<vmem>>, vector<8x512xf32>
    %c0_1 = arith.constant 0 : index
    %c0_2 = arith.constant 0 : index
    %1 = memref.load %arg2[%c0_1, %c0_2] : memref<1x2xf32, #tpu.memory_space<smem>>
    %2 = vector.broadcast %1 : f32 to vector<8x512xf32>
    %3 = arith.addf %0, %2 : vector<8x512xf32>
    %4 = math.cos %3 : vector<8x512xf32>
    %c0_3 = arith.constant 0 : index
    %c0_4 = arith.constant 0 : index
    %5 = vector.load %arg3[%c0_3, %c0_4] : memref<8x512xf32, #tpu.memory_space<vmem>>, vector<8x512xf32>
    tpu.vector_store %arg3[%c0_3, %c0_4], %4 {strides = array<i32>} : memref<8x512xf32, #tpu.memory_space<vmem>>, vector<8x512xf32>,
    return
  }
  func.func @transform_0(%arg0: i32) -> (i32, i32) {
    %c0_i32 = arith.constant 0 : i32
    %c0_i32_0 = arith.constant 0 : i32
    return %arg0, %c0_i32 : i32, i32
  }
  func.func @transform_1(%arg0: i32) -> (i32, i32) {
    %c0_i32 = arith.constant 0 : i32
    %c0_i32_0 = arith.constant 0 : i32
    %c0_i32_1 = arith.constant 0 : i32
    return %c0_i32, %c0_i32_0 : i32, i32
  }
  func.func @transform_2(%arg0: i32) -> (i32, i32) {
    %c0_i32 = arith.constant 0 : i32
    %c0_i32_0 = arith.constant 0 : i32
    return %arg0, %c0_i32 : i32, i32
  }
}

</mosaic_0001>

<bundles_post_ra>
// kernel: tpu_custom_call.1
= control target key start
LH: loop header
LB: loop body
LE: loop exit
PB: predicated region body
PF: predicated region fallthrough
CT: control target
= control target key end

     0   :  { %7 = vsyncpa [#allocation3], 0  ;;  %s914_s0 = inlined_call_operand.hbm [shape: f32[8,512], index: 0, kind: input, shape index: {}]   ;;  %s915_s1 = inlined_call_operand.vmem [shape: f32[1,2], index: 1, kind: input, shape index: {}]   ;;  %s916_s2 = inlined_call_operand.hbm [shape: f32[8,512], index: 2, kind: output, shape index: {}]  }
   0x1   :  { %8 = vsyncpa [#allocation5], 0 }
   0x2   :  { %9 = vsyncpa [#allocation4], 0  ;;  %s26_s11 = sshll.u32 %s915_s1, 4  ;;  %s594_s12 = smov [#allocation2]   ;;  %s27_s11 = int_to_ptr.vmem [resolvable:$true] %s26_s11 }
   0x3   :  { %s16_s13 = sshll.u32 %s594_s12, 4  ;;  %s17_s13 = int_to_ptr.vmem [resolvable:$true] %s16_s13 }
   0x4   :  { %s544_s14 = scalar_lea.vmem %s17_s13, 512  ;;  %p549_p1 = scmp.lt.s32.totalorder %s17_s13, %s17_s13 }
   0x5   :  { %p545_p0 = scmp.ne.s32.totalorder %s17_s13, %s544_s14  ;;  %p550_p2 = scmp.lt.s32.totalorder %s544_s14, %s544_s14 }
   0x7   :  { %p551_p3 = por %p550_p2, %p549_p1 }
   0x9   :  { %p552_p4 = pnand %p551_p3, %p545_p0 }
   0xb   :  { %555 = shalt.err (!%p552_p4)
}
   0xc   :  { %19 = dma.hbm_to_vmem [thread:$0]  %s914_s0, 512, %s17_s13, [#allocation3]  }
   0xd   :  { %s556_s17 = scalar_lea.vmem %s27_s11, 16  ;;  %p561_p6 = scmp.lt.s32.totalorder %s27_s11, %s27_s11 }
   0xe   :  { %p557_p5 = scmp.ne.s32.totalorder %s27_s11, %s556_s17  ;;  %p562_p7 = scmp.lt.s32.totalorder %s556_s17, %s556_s17 }
  0x10   :  { %p563_p8 = por %p562_p7, %p561_p6 }
  0x12   :  { %p564_p9 = pnand %p563_p8, %p557_p5 }
  0x14   :  { %567 = shalt.err (!%p564_p9)
}
  0x15   :  { %s595_s1 = smov [#allocation6]  }
  0x16   :  { %29 = dma.vmem_to_smem %s27_s11, 16, %s595_s1, [#allocation5]  }
  0x17   :  { %588 = dma.done.wait [#allocation3], 512  }
  0x18   :  { %589 = vsyncadd [#allocation3], 4294966784 }
  0x19   :  { %590 = dma.done.wait [#allocation5], 16  }
  0x1a   :  { %591 = vsyncadd [#allocation5], 4294967280 }
  0x1b   :  { %36 = sfence }
  0x1c   :  { %s41_s18 = sld [smem:[#allocation6]]  ;;  %v37_v0 = vld [vmem:[#allocation2] sm:$0xff]  ;;  %v38_v1 = vld [vmem:[#allocation2 + $0x8] sm:$0xff]  ;;  %v39_v2 = vld [vmem:[#allocation2 + $0x10] sm:$0xff]  ;;  %v596_v34 = vmov 683565275  }
  0x1d   :  { %v597_v36 = vmov 2475754826   ;;  %v598_v38 = vmov 2131351028   ;;  %v599_v40 = vmov 2102212464  }
  0x1e   :  { %v600_v42 = vmov 920167782   ;;  %v601_v50 = vmov 1326507024   ;;  %s602_s0 = smov [#allocation7]  }
  0x1f   :  { %s469_s19 = sshll.u32 %s602_s0, 4  ;;  %s470_s19 = int_to_ptr.vmem [resolvable:$true] %s469_s19 }
  0x20   :  { %s568_s20 = scalar_lea.vmem %s470_s19, 512  ;;  %p573_p11 = scmp.lt.s32.totalorder %s470_s19, %s470_s19 }
  0x21   :  { %p569_p10 = scmp.ne.s32.totalorder %s470_s19, %s568_s20  ;;  %p574_p12 = scmp.lt.s32.totalorder %s568_s20, %s568_s20 }
  0x22   :  { %v624_v3 = vstv %s41_s18 }
  0x23   :  { %v627_v4 = vadd.f32 %v624_v3, %v37_v0  ;;  %v630_v5 = vadd.f32 %v624_v3, %v38_v1  ;;  %v633_v6 = vadd.f32 %v624_v3, %v39_v2  ;;  %p575_p13 = por %p574_p12, %p573_p11 }
  0x25   :  { %v47_v7 = vand.u32 2147483647, %v627_v4  ;;  %v50_v8 = vand.u32 2139095040, %v627_v4  ;;  %v150_v9 = vand.u32 2147483647, %v630_v5  ;;  %v153_v10 = vand.u32 2139095040, %v630_v5  ;;  %p576_p0 = pnand %p575_p13, %p569_p10 }
  0x26   :  { %v256_v15 = vand.u32 2139095040, %v633_v6  ;;  %v253_v28 = vand.u32 2147483647, %v633_v6 }
  0x27   :  { %v51_v11 = vshrl.u32 %v50_v8, 23  ;;  %v54_v12 = vand.u32 8388607, %v47_v7  ;;  %v154_v13 = vshrl.u32 %v153_v10, 23  ;;  %v157_v14 = vand.u32 8388607, %v150_v9 }
  0x28   :  { %v257_v18 = vshrl.u32 %v256_v15, 23 }
  0x29   :  { %v479_v16 = vadd.s32 4294967169, %v51_v11  ;;  %v483_v17 = vadd.s32 4294967169, %v154_v13  ;;  %v55_v20 = vor.u32 8388608, %v54_v12  ;;  %v158_v21 = vor.u32 8388608, %v157_v14 }
  0x2a   :  { %v487_v23 = vadd.s32 4294967169, %v257_v18 }
  0x2b   :  { %v57_v19 = vadd.s32 1, %v479_v16  ;;  %v160_v22 = vadd.s32 1, %v483_v17  ;;  %v645_v29 = vshll.u32 %v55_v20, 8  ;;  %v647_v31 = vshll.u32 %v158_v21, 8 }
  0x2c   :  { %v649_v32 = vadd.s32 1, %v487_v23 }
  0x2d   :  { %vm58_vm0 = vcmp.gt.s32.totalorder %v57_v19, 0  ;;  %vm161_vm1 = vcmp.gt.s32.totalorder %v160_v22, 0 }
  0x2e   :  { %v59_v24 = vsel %vm58_vm0, %v57_v19, 0  ;;  %v162_v27 = vsel %vm161_vm1, %v160_v22, 0  ;;  %vm264_vm6 = vcmp.gt.s32.totalorder %v649_v32, 0  ;;  %vm49_vm1 = vcmp.lt.s32.totalorder %v627_v4, 0 }
  0x2f   :  { %v60_v25 = vshrl.u32 %v59_v24, 5  ;;  %v61_v26 = vand.u32 31, %v59_v24  ;;  %v164_v30 = vand.u32 31, %v162_v27  ;;  %v656_v44 = vshrl.u32 %v162_v27, 5 }
  0x31   :  { %v62_v33 = vsub.s32 32, %v61_v26  ;;  %v64_v35 = vshll.u32 %v596_v34, %v61_v26  ;;  %v67_v37 = vshll.u32 %v597_v36, %v61_v26  ;;  %v70_v39 = vshll.u32 %v598_v38, %v61_v26 }
  0x32   :  { %v73_v41 = vshll.u32 %v599_v40, %v61_v26  ;;  %v76_v43 = vshll.u32 %v600_v42, %v61_v26  ;;  %vm79_vm2 = vcmp.lt.s32.totalorder %v60_v25, 1  ;;  %vm80_vm3 = vcmp.lt.s32.totalorder %v60_v25, 2 }
  0x33   :  { %v63_v45 = vshrl.u32 %v596_v34, %v62_v33  ;;  %v65_v46 = vshrl.u32 %v597_v36, %v62_v33  ;;  %v68_v47 = vshrl.u32 %v598_v38, %v62_v33  ;;  %v71_v48 = vshrl.u32 %v599_v40, %v62_v33 }
  0x34   :  { %v74_v49 = vshrl.u32 %v600_v42, %v62_v33  ;;  %v77_v51 = vshrl.u32 %v601_v50, %v62_v33  ;;  %vm82_vm4 = vcmp.lt.s32.totalorder %v60_v25, 4  ;;  %v165_v55 = vsub.s32 32, %v164_v30 }
  0x35   :  { %v66_v52 = vor.u32 %v65_v46, %v64_v35  ;;  %v69_v53 = vor.u32 %v68_v47, %v67_v37  ;;  %v72_v54 = vor.u32 %v71_v48, %v70_v39  ;;  %vm81_vm5 = vcmp.lt.s32.totalorder %v60_v25, 3 }
  0x36   :  { %v75_v56 = vor.u32 %v74_v49, %v73_v41  ;;  %v78_v57 = vor.u32 %v77_v51, %v76_v43  ;;  %v167_v58 = vshll.u32 %v596_v34, %v164_v30  ;;  %v170_v2 = vshll.u32 %v597_v36, %v164_v30  ;;  %v40_v49 = vld [vmem:[#allocation2 + $0x18] sm:$0xff] }
  0x37   :  { %v83_v59 = vsel %vm79_vm2, %v63_v45, %v66_v52  ;;  %v84_v60 = vsel %vm82_vm4, %v72_v54, 2102212464  ;;  %v87_v61 = vsel %vm79_vm2, %v66_v52, %v69_v53  ;;  %v91_v62 = vsel %vm79_vm2, %v69_v53, %v72_v54 }
  0x38   :  { %v85_v63 = vsel %vm81_vm5, %v69_v53, %v84_v60  ;;  %v88_v0 = vsel %vm82_vm4, %v75_v56, 920167782  ;;  %v92_v1 = vsel %vm82_vm4, %v78_v57, 1326507024  ;;  %v166_v11 = vshrl.u32 %v596_v34, %v165_v55 }
  0x39   :  { %v89_v8 = vsel %vm81_vm5, %v72_v54, %v88_v0  ;;  %v93_v10 = vsel %vm81_vm5, %v75_v56, %v92_v1  ;;  %v168_v12 = vshrl.u32 %v597_v36, %v165_v55  ;;  %v86_v13 = vsel %vm80_vm3, %v83_v59, %v85_v63 }
  0x3a   :  { %v90_v14 = vsel %vm80_vm3, %v87_v61, %v89_v8  ;;  %v94_v15 = vsel %vm80_vm3, %v91_v62, %v93_v10  ;;  %v171_v16 = vshrl.u32 %v598_v38, %v165_v55  ;;  %v173_v23 = vshll.u32 %v598_v38, %v164_v30 }
  0x3b   :  { %v677_v17 = vmul.u32.u64.low %v645_v29, %v94_v15  ;;  %v678_v18 = vmul.u32.u64.high %v645_v29, %v94_v15, %v677_v17  ;;  %v681_v19 = vmul.u32.u64.low %v645_v29, %v90_v14  ;;  %v682_v20 = vmul.u32.u64.high %v645_v29, %v90_v14, %v681_v19 }
  0x3c   :  { %v169_v21 = vor.u32 %v168_v12, %v167_v58  ;;  %v172_v22 = vor.u32 %v171_v16, %v170_v2  ;;  %v174_v24 = vshrl.u32 %v599_v40, %v165_v55  ;;  %v176_v25 = vshll.u32 %v599_v40, %v164_v30 }
  0x3d   :  { %v177_v26 = vshrl.u32 %v600_v42, %v165_v55  ;;  %v179_v27 = vshll.u32 %v600_v42, %v164_v30  ;;  %v180_v33 = vshrl.u32 %v601_v50, %v165_v55  ;;  %v102_v35 = vmul.u32 %v645_v29, %v86_v13 }
  0x3e   :  { %v175_v37 = vor.u32 %v174_v24, %v173_v23  ;;  %vm182_vm7 = vcmp.lt.s32.totalorder %v656_v44, 1  ;;  %vm183_vm8 = vcmp.lt.s32.totalorder %v656_v44, 2  ;;  %vm104_vm9 = vc.u32 %v678_v18, %v681_v19 }
  0x3f   :  { %v105_v39 = vadd.s32 1, %v682_v20  ;;  %v178_v41 = vor.u32 %v177_v26, %v176_v25  ;;  %vm184_vm10 = vcmp.lt.s32.totalorder %v656_v44, 3  ;;  %v181_v43 = vor.u32 %v180_v33, %v179_v27 }
  0x40   :  { %vm185_vm11 = vcmp.lt.s32.totalorder %v656_v44, 4  ;;  %v186_v30 = vsel %vm182_vm7, %v166_v11, %v169_v21  ;;  %v190_v45 = vsel %vm182_vm7, %v169_v21, %v172_v22  ;;  %v194_v48 = vsel %vm182_vm7, %v172_v22, %v175_v37 }
  0x41   :  { %v106_v29 = vsel %vm104_vm9, %v105_v39, %v682_v20  ;;  %v187_v46 = vsel %vm185_vm11, %v175_v37, 2102212464  ;;  %v191_v47 = vsel %vm185_vm11, %v178_v41, 920167782  ;;  %v195_v54 = vsel %vm185_vm11, %v181_v43, 1326507024 }
  0x42   :  { %v107_v51 = vadd.s32 %v106_v29, %v102_v35  ;;  %v188_v52 = vsel %vm184_vm10, %v172_v22, %v187_v46  ;;  %v192_v53 = vsel %vm184_vm10, %v175_v37, %v191_v47  ;;  %v196_v57 = vsel %vm184_vm10, %v178_v41, %v195_v54 }
  0x43   :  { %v189_v55 = vsel %vm183_vm8, %v186_v30, %v188_v52  ;;  %v193_v56 = vsel %vm183_vm8, %v190_v45, %v192_v53  ;;  %v265_v58 = vsel %vm264_vm6, %v649_v32, 0  ;;  %v197_v60 = vsel %vm183_vm8, %v194_v48, %v196_v57 }
  0x44   :  { %v108_v59 = vadd.s32 536870912, %v107_v51  ;;  %v716_v61 = vmul.u32.u64.low %v647_v31, %v193_v56  ;;  %v717_v62 = vmul.u32.u64.high %v647_v31, %v193_v56, %v716_v61  ;;  %v721_v63 = vadd.f32 %v624_v3, %v40_v49 }
  0x45   :  { %v724_v0 = vmul.u32.u64.low %v647_v31, %v197_v60  ;;  %v725_v1 = vmul.u32.u64.high %v647_v31, %v197_v60, %v724_v0  ;;  %v260_v2 = vand.u32 8388607, %v253_v28  ;;  %v267_v8 = vand.u32 31, %v265_v58 }
  0x46   :  { %v729_v32 = vshrl.u32 %v108_v59, 30  ;;  %v205_v44 = vmul.u32 %v647_v31, %v189_v55  ;;  %v208_v11 = vadd.s32 1, %v717_v62  ;;  %v359_v13 = vand.u32 2139095040, %v721_v63 }
  0x47   :  { %v268_v12 = vsub.s32 32, %v267_v8  ;;  %vm207_vm12 = vc.u32 %v725_v1, %v716_v61  ;;  %v261_v3 = vor.u32 8388608, %v260_v2  ;;  %v266_v16 = vshrl.u32 %v265_v58, 5 }
  0x48   :  { %v110_v10 = vshll.u32 %v729_v32, 30  ;;  %v209_v15 = vsel %vm207_vm12, %v208_v11, %v717_v62  ;;  %v270_v20 = vshll.u32 %v596_v34, %v267_v8  ;;  %v273_v21 = vshll.u32 %v597_v36, %v267_v8 }
  0x49   :  { %v210_v17 = vadd.s32 %v209_v15, %v205_v44  ;;  %v271_v31 = vshrl.u32 %v597_v36, %v268_v12  ;;  %v274_v23 = vshrl.u32 %v598_v38, %v268_v12  ;;  %v276_v24 = vshll.u32 %v598_v38, %v267_v8 }
  0x4a   :  { %v737_v14 = vsub.s32 %v107_v51, %v110_v10  ;;  %v277_v25 = vshrl.u32 %v599_v40, %v268_v12  ;;  %v279_v27 = vshll.u32 %v599_v40, %v267_v8  ;;  %v748_v33 = vshll.u32 %v261_v3, 8 }
  0x4b   :  { %v211_v26 = vadd.s32 536870912, %v210_v17  ;;  %v360_v35 = vshrl.u32 %v359_v13, 23  ;;  %v103_v37 = vadd.s32 %v681_v19, %v678_v18  ;;  %v269_v41 = vshrl.u32 %v596_v34, %v268_v12 }
  0x4c   :  { %v113_v22 = vsub.s32 0, %v737_v14  ;;  %vm288_vm13 = vcmp.lt.s32.totalorder %v266_v16, 4  ;;  %v272_v30 = vor.u32 %v271_v31, %v270_v20  ;;  %v280_v45 = vshrl.u32 %v600_v42, %v268_v12 }
  0x4d   :  { %v754_v43 = vshrl.u32 %v211_v26, 30  ;;  %v282_v29 = vshll.u32 %v600_v42, %v267_v8  ;;  %v275_v47 = vor.u32 %v274_v23, %v273_v21  ;;  %v278_v48 = vor.u32 %v277_v25, %v276_v24 }
  0x4e   :  { %v480_v39 = vmin.u32 %v113_v22, %v737_v14  ;;  %v283_v49 = vshrl.u32 %v601_v50, %v268_v12  ;;  %v281_v18 = vor.u32 %v280_v45, %v279_v27  ;;  %vm285_vm14 = vcmp.lt.s32.totalorder %v266_v16, 1 }
  0x4f   :  { %v213_v51 = vshll.u32 %v754_v43, 30  ;;  %vm287_vm15 = vcmp.lt.s32.totalorder %v266_v16, 3  ;;  %v290_v53 = vsel %vm288_vm13, %v278_v48, 2102212464  ;;  %v491_v54 = vadd.s32 4294967169, %v360_v35 }
  0x50   :  { %v115_v46 = vclz %v480_v39  ;;  %v284_v52 = vor.u32 %v283_v49, %v282_v29  ;;  %vm286_vm0 = vcmp.lt.s32.totalorder %v266_v16, 2  ;;  %v289_v56 = vsel %vm285_vm14, %v269_v41, %v272_v30 }
  0x51   :  { %v761_v55 = vsub.s32 %v210_v17, %v213_v51  ;;  %v294_v57 = vsel %vm288_vm13, %v281_v18, 920167782  ;;  %v293_v58 = vsel %vm285_vm14, %v272_v30, %v275_v47  ;;  %v291_v2 = vsel %vm287_vm15, %v275_v47, %v290_v53 }
  0x52   :  { %v481_v19 = vadd.s32 4294967294, %v115_v46  ;;  %v295_v59 = vsel %vm287_vm15, %v278_v48, %v294_v57  ;;  %v298_v60 = vsel %vm288_vm13, %v284_v52, 1326507024  ;;  %v297_v8 = vsel %vm285_vm14, %v275_v47, %v278_v48 }
  0x53   :  { %v216_v0 = vsub.s32 0, %v761_v55  ;;  %v299_v12 = vsel %vm287_vm15, %v281_v18, %v298_v60  ;;  %v133_v3 = vsub.s32 4, %v729_v32  ;;  %v296_v15 = vsel %vm286_vm0, %v293_v58, %v295_v59 }
  0x54   :  { %vm482_vm2 = vcmp.lt.s32.totalorder %v481_v19, 0  ;;  %v356_v17 = vand.u32 2147483647, %v721_v63  ;;  %v292_v21 = vsel %vm286_vm0, %v289_v56, %v291_v2  ;;  %v300_v22 = vsel %vm286_vm0, %v297_v8, %v299_v12 }
  0x55   :  { %v118_v62 = vsel %vm482_vm2, 0, %v481_v19  ;;  %v484_v13 = vmin.u32 %v216_v0, %v761_v55  ;;  %v366_v25 = vadd.s32 1, %v491_v54  ;;  %vm791_vm3 = vcmp.le.f32.partialorder %v47_v7, 0.7853982 }
  0x56   :  { %v119_v44 = vsub.s32 32, %v118_v62  ;;  %v120_v10 = vshll.u32 %v737_v14, %v118_v62  ;;  %v123_v11 = vsub.s32 4294967266, %v118_v62  ;;  %v797_v41 = vand.u32 8388607, %v356_v17 }
  0x57   :  { %v218_v23 = vclz %v484_v13  ;;  %v781_v14 = vmul.u32.u64.low %v748_v33, %v300_v22  ;;  %v782_v24 = vmul.u32.u64.high %v748_v33, %v300_v22, %v781_v14  ;;  %vm367_vm4 = vcmp.gt.s32.totalorder %v366_v25, 0 }
  0x58   :  { %v121_v20 = vshrl.u32 %v103_v37, %v119_v44  ;;  %v124_v31 = vadd.s32 127, %v123_v11  ;;  %v785_v35 = vmul.u32.u64.low %v748_v33, %v296_v15  ;;  %v786_v39 = vmul.u32.u64.high %v748_v33, %v296_v15, %v785_v35 }
  0x59   :  { %v485_v16 = vadd.s32 4294967294, %v218_v23  ;;  %v206_v29 = vadd.s32 %v716_v61, %v725_v1  ;;  %v368_v46 = vsel %vm367_vm4, %v366_v25, 0  ;;  %v134_v47 = vsel %vm49_vm1, %v133_v3, %v729_v32 }
  0x5a   :  { %v122_v26 = vor.u32 %v121_v20, %v120_v10  ;;  %v125_v27 = vshll.u32 %v124_v31, 23  ;;  %v308_v7 = vmul.u32 %v748_v33, %v292_v21  ;;  %vm310_vm6 = vc.u32 %v782_v24, %v785_v35 }
  0x5b   :  { %vm486_vm5 = vcmp.lt.s32.totalorder %v485_v16, 0  ;;  %v311_v51 = vadd.s32 1, %v786_v39  ;;  %v370_v18 = vand.u32 31, %v368_v46  ;;  %v364_v1 = vor.u32 8388608, %v797_v41 }
  0x5c   :  { %v126_v30 = vor.u32 4788187, %v125_v27  ;;  %v129_v45 = vcvt.s32.f32 %v122_v26  ;;  %v221_v49 = vsel %vm486_vm5, 0, %v485_v16  ;;  %v136_v32 = vsel %vm791_vm3, 0, %v134_v47 }
  0x5d   :  { %v222_v19 = vsub.s32 32, %v221_v49  ;;  %v223_v52 = vshll.u32 %v761_v55, %v221_v49  ;;  %v226_v61 = vsub.s32 4294967266, %v221_v49  ;;  %v312_v33 = vsel %vm310_vm6, %v311_v51, %v786_v39 }
  0x5e   :  { %v127_v48 = vand.u32 2147483647, %v126_v30  ;;  %v371_v54 = vsub.s32 32, %v370_v18  ;;  %v236_v58 = vsub.s32 4, %v754_v43  ;;  %v313_v59 = vadd.s32 %v312_v33, %v308_v7 }
  0x5f   :  { %v224_v56 = vshrl.u32 %v206_v29, %v222_v19  ;;  %v227_v57 = vadd.s32 127, %v226_v61  ;;  %vm152_vm7 = vcmp.lt.s32.totalorder %v630_v5, 0  ;;  %v369_v62 = vshrl.u32 %v368_v46, 5 }
  0x60   :  { %v130_v53 = vmul.f32 %v129_v45, %v127_v48  ;;  %v373_v55 = vshll.u32 %v596_v34, %v370_v18  ;;  %v376_v0 = vshll.u32 %v597_v36, %v370_v18  ;;  %v314_v44 = vadd.s32 536870912, %v313_v59 }
  0x61   :  { %v225_v2 = vor.u32 %v224_v56, %v223_v52  ;;  %v228_v8 = vshll.u32 %v227_v57, 23  ;;  %v374_v10 = vshrl.u32 %v597_v36, %v371_v54  ;;  %v377_v12 = vshrl.u32 %v598_v38, %v371_v54 }
  0x62   :  { %v131_v60 = vxor.u32 2147483648, %v130_v53  ;;  %v379_v3 = vshll.u32 %v598_v38, %v370_v18  ;;  %v380_v13 = vshrl.u32 %v599_v40, %v371_v54  ;;  %v826_v21 = vshrl.u32 %v314_v44, 30 }
  0x63   :  { %v229_v20 = vor.u32 4788187, %v228_v8  ;;  %v232_v31 = vcvt.s32.f32 %v225_v2  ;;  %v382_v36 = vshll.u32 %v599_v40, %v370_v18  ;;  %v383_v22 = vshrl.u32 %v600_v42, %v371_v54 }
  0x64   :  { %v132_v11 = vsel %vm49_vm1, %v131_v60, %v130_v53  ;;  %vm388_vm8 = vcmp.lt.s32.totalorder %v369_v62, 1  ;;  %v316_v38 = vshll.u32 %v826_v21, 30  ;;  %v375_v14 = vor.u32 %v374_v10, %v373_v55 }
  0x65   :  { %v135_v15 = vsel %vm791_vm3, %v627_v4, %v132_v11  ;;  %v230_v23 = vand.u32 2147483647, %v229_v20  ;;  %v378_v25 = vor.u32 %v377_v12, %v376_v0  ;;  %v384_v26 = vor.u32 %v383_v22, %v382_v36 }
  0x66   :  { %520 = vcosq.f32 %v135_v15  ;;  %v385_v27 = vshll.u32 %v600_v42, %v370_v18  ;;  %v386_v39 = vshrl.u32 %v601_v50, %v371_v54  ;;  %v833_v16 = vsub.s32 %v313_v59, %v316_v38 }
  0x67   :  { %522 = vsinq.f32 %v135_v15  ;;  %v233_v37 = vmul.f32 %v232_v31, %v230_v23  ;;  %v372_v41 = vshrl.u32 %v596_v34, %v371_v54  ;;  %v381_v40 = vor.u32 %v380_v13, %v379_v3 }
  0x68   :  { %v140_v30 = vand.u32 3, %v136_v32  ;;  %vm838_vm9 = vcmp.le.f32.partialorder %v150_v9, 0.7853982  ;;  %vm390_vm10 = vcmp.lt.s32.totalorder %v369_v62, 3  ;;  %vm391_vm11 = vcmp.lt.s32.totalorder %v369_v62, 4 }
  0x69   :  { %v234_v29 = vxor.u32 2147483648, %v233_v37  ;;  %v319_v42 = vsub.s32 0, %v833_v16  ;;  %v387_v46 = vor.u32 %v386_v39, %v385_v27  ;;  %v393_v50 = vsel %vm391_vm11, %v381_v40, 2102212464 }
  0x6a   :  { %vm389_vm12 = vcmp.lt.s32.totalorder %v369_v62, 2  ;;  %v396_v47 = vsel %vm388_vm8, %v375_v14, %v378_v25  ;;  %v397_v34 = vsel %vm391_vm11, %v384_v26, 920167782  ;;  %v404_v7 = vshll.u32 %v364_v1, 8 }
  0x6b   :  { %v235_v9 = vsel %vm152_vm7, %v234_v29, %v233_v37  ;;  %v237_v48 = vsel %vm152_vm7, %v236_v58, %v754_v43  ;;  %v488_v49 = vmin.u32 %v319_v42, %v833_v16  ;;  %v392_v51 = vsel %vm388_vm8, %v372_v41, %v375_v14 }
  0x6c   :  { %v238_v18 = vsel %vm838_vm9, %v630_v5, %v235_v9  ;;  %v394_v19 = vsel %vm390_vm10, %v378_v25, %v393_v50  ;;  %v398_v52 = vsel %vm390_vm10, %v381_v40, %v397_v34  ;;  %v400_v61 = vsel %vm388_vm8, %v378_v25, %v381_v40 }
  0x6d   :  { %524 = vcosq.f32 %v238_v18  ;;  %v321_v1 = vclz %v488_v49  ;;  %v399_v53 = vsel %vm389_vm12, %v396_v47, %v398_v52  ;;  %v401_v43 = vsel %vm391_vm11, %v387_v46, 1326507024 }
  0x6e   :  { %526 = vsinq.f32 %v238_v18  ;;  %v402_v32 = vsel %vm390_vm10, %v384_v26, %v401_v43  ;;  %v862_v33 = vmul.u32.u64.low %v404_v7, %v399_v53  ;;  %v863_v54 = vmul.u32.u64.high %v404_v7, %v399_v53, %v862_v33 }
  0x6f   :  { %v489_v56 = vadd.s32 4294967294, %v321_v1  ;;  %v395_v57 = vsel %vm389_vm12, %v392_v51, %v394_v19  ;;  %v403_v58 = vsel %vm389_vm12, %v400_v61, %v402_v32  ;;  %vm141_vm13 = vcmp.lt.s32.totalorder %v140_v30, 2 }
  0x70   :  { %vm142_vm14 = vcmp.eq.s32.totalorder %v140_v30, 0  ;;  %v868_v59 = vmul.u32.u64.low %v404_v7, %v403_v58  ;;  %v869_v60 = vmul.u32.u64.high %v404_v7, %v403_v58, %v868_v59  ;;  %vm145_vm15 = vcmp.eq.s32.totalorder %v140_v30, 2 }
  0x71   :  { %v239_v0 = vsel %vm838_vm9, 0, %v237_v48  ;;  %v309_v2 = vadd.s32 %v785_v35, %v782_v24  ;;  %vm490_vm0 = vcmp.lt.s32.totalorder %v489_v56, 0  ;;  %v411_v11 = vmul.u32 %v404_v7, %v395_v57 }
  0x72   :  { %v324_v10 = vsel %vm490_vm0, 0, %v489_v56  ;;  %v414_v62 = vadd.s32 1, %v863_v54  ;;  %vm139_vm1 = vweird.f32 %v627_v4  ;;  %vm413_vm2 = vc.u32 %v869_v60, %v862_v33 }
  0x73   :  { %v521_v55 = vpop.eup %520  ;;  %v325_v3 = vsub.s32 32, %v324_v10  ;;  %v326_v13 = vshll.u32 %v833_v16, %v324_v10  ;;  %v329_v15 = vsub.s32 4294967266, %v324_v10  ;;  %v243_v23 = vand.u32 3, %v239_v0 }
  0x74   :  { %v523_v8 = vpop.eup %522  ;;  %v146_v44 = vxor.u32 2147483648, %v521_v55  ;;  %v415_v36 = vsel %vm413_vm2, %v414_v62, %v863_v54  ;;  %vm242_vm6 = vweird.f32 %v630_v5  ;;  %vm255_vm7 = vcmp.lt.s32.totalorder %v633_v6, 0 }
  0x75   :  { %v143_v12 = vxor.u32 2147483648, %v523_v8  ;;  %v327_v35 = vshrl.u32 %v309_v2, %v325_v3  ;;  %v330_v31 = vadd.s32 127, %v329_v15  ;;  %v416_v38 = vadd.s32 %v415_v36, %v411_v11 }
  0x76   :  { %v147_v20 = vsel %vm145_vm15, %v146_v44, %v523_v8  ;;  %vm248_vm3 = vcmp.eq.s32.totalorder %v243_v23, 2  ;;  %vm245_vm4 = vcmp.eq.s32.totalorder %v243_v23, 0  ;;  %vm244_vm5 = vcmp.lt.s32.totalorder %v243_v23, 2 }
  0x77   :  { %v144_v24 = vsel %vm142_vm14, %v521_v55, %v143_v12  ;;  %v328_v25 = vor.u32 %v327_v35, %v326_v13  ;;  %v331_v26 = vshll.u32 %v330_v31, 23  ;;  %v417_v27 = vadd.s32 536870912, %v416_v38 }
  0x78   :  { %v148_v22 = vsel %vm141_vm13, %v144_v24, %v147_v20  ;;  %vm890_vm8 = vcmp.le.f32.partialorder %v253_v28, 0.7853982  ;;  %v339_v5 = vsub.s32 4, %v826_v21  ;;  %v412_v1 = vadd.s32 %v862_v33, %v869_v60 }
  0x79   :  { %v149_v14 = vsel %vm139_vm1, nan, %v148_v22  ;;  %v332_v4 = vor.u32 4788187, %v331_v26  ;;  %v335_v39 = vcvt.s32.f32 %v328_v25  ;;  %v883_v16 = vshrl.u32 %v417_v27, 30 }
  0x7a   :  { %459 = vst [vmem:[#allocation7] sm:$0xff] %v149_v14  ;;  %v525_v37 = vpop.eup %524  ;;  %v340_v28 = vsel %vm255_vm7, %v339_v5, %v826_v21  ;;  %vm345_vm13 = vweird.f32 %v633_v6  ;;  %vm358_vm14 = vcmp.lt.s32.totalorder %v721_v63, 0  ;;  %vm357_vm15 = vcmp.le.f32.partialorder %v356_v17, 0.7853982 }
  0x7b   :  { %v527_v41 = vpop.eup %526  ;;  %v249_v40 = vxor.u32 2147483648, %v525_v37  ;;  %v333_v45 = vand.u32 2147483647, %v332_v4  ;;  %v419_v29 = vshll.u32 %v883_v16, 30  ;;  %v342_v53 = vsel %vm890_vm8, 0, %v340_v28 }
  0x7c   :  { %v246_v30 = vxor.u32 2147483648, %v527_v41  ;;  %v346_v57 = vand.u32 3, %v342_v53  ;;  %v442_v24 = vsub.s32 4, %v883_v16 }
  0x7d   :  { %v250_v42 = vsel %vm248_vm3, %v249_v40, %v527_v41  ;;  %v336_v46 = vmul.f32 %v335_v39, %v333_v45  ;;  %v420_v47 = vsub.s32 %v416_v38, %v419_v29  ;;  %vm448_vm3 = vweird.f32 %v721_v63 }
  0x7e   :  { %v247_v50 = vsel %vm245_vm4, %v525_v37, %v246_v30  ;;  %vm351_vm10 = vcmp.eq.s32.totalorder %v346_v57, 2  ;;  %vm348_vm11 = vcmp.eq.s32.totalorder %v346_v57, 0  ;;  %vm347_vm12 = vcmp.lt.s32.totalorder %v346_v57, 2 }
  0x7f   :  { %v251_v34 = vsel %vm244_vm5, %v247_v50, %v250_v42  ;;  %v337_v9 = vxor.u32 2147483648, %v336_v46  ;;  %v422_v49 = vsub.s32 0, %v420_v47 }
  0x80   :  { %v252_v48 = vsel %vm242_vm6, nan, %v251_v34 }
  0x81   :  { %v338_v51 = vsel %vm255_vm7, %v337_v9, %v336_v46  ;;  %460 = vst [vmem:[#allocation7 + $0x8] sm:$0xff] %v252_v48  ;;  %v492_v19 = vmin.u32 %v422_v49, %v420_v47 }
  0x82   :  { %v341_v18 = vsel %vm890_vm8, %v633_v6, %v338_v51  ;;  %v443_v6 = vsel %vm358_vm14, %v442_v24, %v883_v16 }
  0x83   :  { %528 = vcosq.f32 %v341_v18  ;;  %v424_v52 = vclz %v492_v19  ;;  %v445_v31 = vsel %vm357_vm15, 0, %v443_v6 }
  0x84   :  { %530 = vsinq.f32 %v341_v18  ;;  %v449_v36 = vand.u32 3, %v445_v31 }
  0x85   :  { %v493_v61 = vadd.s32 4294967294, %v424_v52 }
  0x86   :  { %vm454_vm0 = vcmp.eq.s32.totalorder %v449_v36, 2  ;;  %vm451_vm1 = vcmp.eq.s32.totalorder %v449_v36, 0  ;;  %vm450_vm2 = vcmp.lt.s32.totalorder %v449_v36, 2 }
  0x87   :  { %vm494_vm9 = vcmp.lt.s32.totalorder %v493_v61, 0 }
  0x88   :  { %v427_v43 = vsel %vm494_vm9, 0, %v493_v61 }
  0x89   :  { %v428_v32 = vsub.s32 32, %v427_v43  ;;  %v429_v54 = vshll.u32 %v420_v47, %v427_v43  ;;  %v432_v56 = vsub.s32 4294967266, %v427_v43 }
  0x8b   :  { %v430_v58 = vshrl.u32 %v412_v1, %v428_v32  ;;  %v433_v59 = vadd.s32 127, %v432_v56 }
  0x8d   :  { %v431_v55 = vor.u32 %v430_v58, %v429_v54  ;;  %v434_v0 = vshll.u32 %v433_v59, 23 }
  0x8f   :  { %v435_v21 = vor.u32 4788187, %v434_v0  ;;  %v438_v8 = vcvt.s32.f32 %v431_v55 }
  0x90   :  { %v529_v2 = vpop.eup %528 }
  0x91   :  { %v531_v44 = vpop.eup %530  ;;  %v352_v33 = vxor.u32 2147483648, %v529_v2  ;;  %v436_v10 = vand.u32 2147483647, %v435_v21 }
  0x92   :  { %v349_v60 = vxor.u32 2147483648, %v531_v44 }
  0x93   :  { %v353_v11 = vsel %vm351_vm10, %v352_v33, %v531_v44  ;;  %v439_v12 = vmul.f32 %v438_v8, %v436_v10 }
  0x94   :  { %v350_v62 = vsel %vm348_vm11, %v529_v2, %v349_v60 }
  0x95   :  { %v354_v3 = vsel %vm347_vm12, %v350_v62, %v353_v11  ;;  %v440_v15 = vxor.u32 2147483648, %v439_v12 }
  0x96   :  { %v355_v13 = vsel %vm345_vm13, nan, %v354_v3 }
  0x97   :  { %461 = vst [vmem:[#allocation7 + $0x10] sm:$0xff] %v355_v13  ;;  %v441_v20 = vsel %vm358_vm14, %v440_v15, %v439_v12 }
  0x98   :  { %v444_v35 = vsel %vm357_vm15, %v721_v63, %v441_v20 }
  0x99   :  { %532 = vcosq.f32 %v444_v35 }
  0x9a   :  { %534 = vsinq.f32 %v444_v35 }
  0xa6   :  { %v533_v22 = vpop.eup %532 }
  0xa7   :  { %v535_v23 = vpop.eup %534  ;;  %v455_v38 = vxor.u32 2147483648, %v533_v22 }
  0xa8   :  { %v452_v17 = vxor.u32 2147483648, %v535_v23 }
  0xa9   :  { %v456_v14 = vsel %vm454_vm0, %v455_v38, %v535_v23 }
  0xaa   :  { %v453_v25 = vsel %vm451_vm1, %v533_v22, %v452_v17 }
  0xab   :  { %v457_v26 = vsel %vm450_vm2, %v453_v25, %v456_v14 }
  0xac   :  { %v458_v27 = vsel %vm448_vm3, nan, %v457_v26 }
  0xad   :  { %462 = vst [vmem:[#allocation7 + $0x18] sm:$0xff] %v458_v27 }
  0xae   :  { %579 = shalt.err (!%p576_p0)
}
  0xaf   :  { %472 = dma.vmem_to_hbm [thread:$0]  %s470_s19, 512, %s916_s2, [#allocation4]  }
  0xb0   :  { %592 = dma.done.wait [#allocation4], 512  }
  0xb1   :  { %593 = vsyncadd [#allocation4], 4294966784 }
  0xb2   :  { %476 = vsyncpa [#allocation3], 1 }
  0xb3   :  { %477 = vsyncpa [#allocation4], 1 }
  0xb4   :  { %478 = vsyncpa [#allocation5], 1 }

</bundles_post_ra>
